<compile_context>
chip_gen: v7x
topology: tpu7x:2x2x1
jax: 0.10.0
libtpu: 0.0.40
codegen_flags: <defaults>
</compile_context>

<pallas_src>
import functools

import jax
import jax.numpy as jnp
from jax.experimental import pallas as pl
from jax.experimental.pallas import tpu as pltpu

PAD_TOKEN_ID = 0        # bert-base-uncased pad token id
NORM_EPS = 1e-12        # F.normalize default eps
_LANE = 128             # TPU lane width
_MAX_TILE_M = 1024      # upper bound on flattened rows per grid step
_MIN_GRID_STEPS = 4     # keep >=4 grid steps so v7x megacore shards the rows


def _round_up(x, m):
    return (x + m - 1) // m * m


def _fc_norm_kernel(x_ref, w_ref, b_ref, out_ref, *, normalize):
    """One (TILE_M, Hp) x (Hp, Ep) matmul + bias + optional L2-normalize."""
    # Single lane-dense MXU matmul (bf16 in, f32 accumulate).
    y = jnp.dot(x_ref[...], w_ref[...], preferred_element_type=jnp.float32)
    y = y + b_ref[...]                       # (1, Ep) broadcast over rows
    if normalize:
        # F.normalize(p=2, dim=-1): y / max(||y||, eps).  rsqrt rides the
        # (otherwise idle) EUP slot; the cross-lane sum rides the XLU slot.
        # rsqrt(max(sum(y*y), eps^2)) == 1/max(||y||, eps) since sqrt is
        # monotone.
        sq = jnp.sum(y * y, axis=-1, keepdims=True)
        y = y * jax.lax.rsqrt(jnp.maximum(sq, NORM_EPS * NORM_EPS))
    out_ref[...] = y.astype(out_ref.dtype)   # bf16 store -> half the writeback


def _pick_tile_m(m):
    """Largest 8-aligned row tile <= _MAX_TILE_M that keeps >=_MIN_GRID_STEPS."""
    tm = _round_up(max(-(-m // _MIN_GRID_STEPS), 8), 8)
    return int(min(tm, _MAX_TILE_M))


def _vmem_budget_bytes(tm, hp, ep):
    x_b = tm * hp * 2          # bf16 input tile
    o_b = tm * ep * 2          # bf16 output tile
    w_b = hp * ep * 2          # bf16 weights (resident)
    b_b = ep * 4               # f32 bias (resident)
    acc_b = tm * ep * 4        # f32 intermediate inside the kernel body
    # Double-buffer only the streamed tiles; resident weight/bias counted
    # twice (default buffering) -- no extra 2x on top of that.
    est = 2 * (x_b + o_b) + 2 * (w_b + b_b) + acc_b
    try:
        cap = int(pltpu.get_tpu_info().vmem_capacity_bytes) * 3 // 4
    except Exception:          # pragma: no cover - conservative fallback
        cap = 48 << 20         # safe on every generation (v7x = 64 MiB phys)
    return int(min(max(est + (4 << 20), 16 << 20), cap))


@functools.partial(jax.jit, static_argnames=("normalize",))
def _run_flat(x, w, b, *, normalize):
    """cap_emb = (maybe-normalized)(x @ w + b) for flattened (rows, H) input."""
    m, h = x.shape
    e = w.shape[1]
    hp = _round_up(h, _LANE)
    ep = _round_up(e, _LANE)
    tm = _pick_tile_m(m)

    # Cast once to bf16 (no-op if already bf16).  Column padding only happens
    # when H / E are not lane-aligned -- for BERT (H=768) and typical embed
    # sizes the pad pass (an extra HBM read+write over the slab) vanishes.
    # Rows are NEVER padded: the grid uses cdiv and Pallas drops the ragged
    # tail block's out-of-bounds writes (rows are independent, so garbage in
    # the tail's padded reads never touches real rows).
    x_in = x.astype(jnp.bfloat16)
    if hp != h:
        x_in = jnp.zeros((m, hp), jnp.bfloat16).at[:, :h].set(x_in)
    w_in = w.astype(jnp.bfloat16)
    if hp != h or ep != e:
        w_in = jnp.zeros((hp, ep), jnp.bfloat16).at[:h, :e].set(w_in)
    b_in = b.astype(jnp.float32).reshape(1, e)
    if ep != e:
        b_in = jnp.zeros((1, ep), jnp.float32).at[:, :e].set(b_in)

    kernel = functools.partial(_fc_norm_kernel, normalize=normalize)
    out = pl.pallas_call(
        kernel,
        out_shape=jax.ShapeDtypeStruct((m, ep), jnp.bfloat16),
        grid_spec=pltpu.PrefetchScalarGridSpec(
            num_scalar_prefetch=0,
            grid=(pl.cdiv(m, tm),),
            in_specs=[
                pl.BlockSpec((tm, hp), lambda i: (i, 0)),   # streamed row tile
                pl.BlockSpec((hp, ep), lambda i: (0, 0)),   # weights resident
                pl.BlockSpec((1, ep), lambda i: (0, 0)),    # bias resident
            ],
            out_specs=pl.BlockSpec((tm, ep), lambda i: (i, 0)),
        ),
        compiler_params=pltpu.CompilerParams(
            dimension_semantics=("parallel",),
            vmem_limit_bytes=_vmem_budget_bytes(tm, hp, ep),
        ),
    )(x_in, w_in, b_in)
    if ep != e:
        out = out[:, :e]       # slice only when E needed column padding
    return out


class TextListExtractorPallas:
    """JAX/Pallas analogue of TextListExtractor.

    `forward` consumes a list of caption groups, each a dict with the
    pre-computed BERT last_hidden_state (N, S, H) and input_ids (N, S).
    """

    def __init__(self, hidden_size, embed_size, no_txtnorm=False, seed=0):
        self.hidden_size = hidden_size
        self.embed_size = embed_size
        self.no_txtnorm = no_txtnorm
        key = jax.random.PRNGKey(seed)
        kw, kb = jax.random.split(key)
        # nn.Linear(hidden, embed): weight stored transposed (H, E) for the
        # lane-dense matmul; bias (1, E).
        bound = 1.0 / (hidden_size ** 0.5)
        self.w = jax.random.uniform(
            kw, (hidden_size, embed_size), jnp.float32, -bound, bound)
        self.b = jax.random.uniform(
            kb, (1, embed_size), jnp.float32, -bound, bound)

    def forward(self, groups):
        # TODO(synk): BertTokenizer / pretrained BertModel are not reproduced;
        # groups carry precomputed last_hidden_state + input_ids.
        shapes = [tuple(g["last_hidden_state"].shape) for g in groups]

        # One fused, gridded pallas_call over all groups (no per-group
        # retrace/launch).  Cast to bf16 BEFORE the concat so the flattened
        # slab is half-width; upstream encoders that already emit bf16 skip
        # the convert pass entirely.
        flat = jnp.concatenate(
            [g["last_hidden_state"].astype(jnp.bfloat16)
             .reshape(-1, self.hidden_size) for g in groups], axis=0)
        emb_flat = _run_flat(flat, self.w, self.b,
                             normalize=not self.no_txtnorm)

        # cap_len for every caption in ONE vectorized non-pad reduction
        # (single dispatch instead of O(num_groups) tiny ones).
        max_s = max(s for (_, s, _) in shapes)
        ids_all = jnp.concatenate(
            [g["input_ids"] if g["input_ids"].shape[1] == max_s else
             jnp.pad(g["input_ids"],
                     ((0, 0), (0, max_s - g["input_ids"].shape[1])),
                     constant_values=PAD_TOKEN_ID)
             for g in groups], axis=0)
        len_all = jnp.sum(ids_all != PAD_TOKEN_ID, axis=1).astype(jnp.int32)

        cap_emb_list, cap_len_list = [], []
        row_off, cap_off = 0, 0
        for (n, s, _) in shapes:
            rows = n * s
            cap_emb_list.append(
                emb_flat[row_off:row_off + rows].reshape(n, s, self.embed_size))
            cap_len_list.append(len_all[cap_off:cap_off + n])
            row_off += rows
            cap_off += n
        return cap_emb_list, cap_len_list


if __name__ == "__main__":
    HIDDEN = 32   # stand-in for bert hidden_size (768)
    EMBED = 32    # args.embed_size
    SEQ = 8       # padded sequence length per group

    key = jax.random.PRNGKey(0)
    extractor = TextListExtractorPallas(HIDDEN, EMBED, no_txtnorm=False, seed=0)

    # Two caption groups with 3 and 5 captions; synthetic tokenizer/BERT output.
    groups = []
    for n_caps in (3, 5):
        key, k_ids, k_hid, k_len = jax.random.split(key, 4)
        true_len = jax.random.randint(k_len, (n_caps,), 2, SEQ + 1)
        pos = jnp.arange(SEQ)[None, :]
        valid = pos < true_len[:, None]
        tok = jax.random.randint(k_ids, (n_caps, SEQ), 1, 30522)
        input_ids = jnp.where(valid, tok, PAD_TOKEN_ID).astype(jnp.int32)
        hidden = jax.random.normal(k_hid, (n_caps, SEQ, HIDDEN), jnp.float32)
        groups.append({"input_ids": input_ids, "last_hidden_state": hidden})

    cap_emb_list, cap_len_list = extractor.forward(groups)
    for emb, lens in zip(cap_emb_list, cap_len_list):
        jax.block_until_ready(emb)
        jax.block_until_ready(lens)

    # Sanity check against a pure-JAX reference (bf16-rounded inputs/weights,
    # f32 math -- same numerics the kernel sees; output is bf16-rounded).
    wb = extractor.w.astype(jnp.bfloat16).astype(jnp.float32)
    for g, emb, lens in zip(groups, cap_emb_list, cap_len_list):
        xb = g["last_hidden_state"].astype(jnp.bfloat16).astype(jnp.float32)
        ref = jnp.einsum("nsh,he->nse", xb, wb) + extractor.b[None, :, :]
        ref = ref / jnp.maximum(
            jnp.linalg.norm(ref, axis=-1, keepdims=True), NORM_EPS)
        assert jnp.allclose(emb.astype(jnp.float32), ref,
                            atol=2e-2, rtol=2e-2), "emb mismatch"
        ref_len = jnp.sum(g["input_ids"] != PAD_TOKEN_ID, axis=1)
        assert jnp.array_equal(lens, ref_len), "len mismatch"

    # no_txtnorm=True path (non-normalizing kernel specialization).
    extractor_nn = TextListExtractorPallas(HIDDEN, EMBED, no_txtnorm=True,
                                           seed=0)
    emb_nn_list, _ = extractor_nn.forward(groups)
    jax.block_until_ready(emb_nn_list[-1])
    for g, emb_nn in zip(groups, emb_nn_list):
        xb = g["last_hidden_state"].astype(jnp.bfloat16).astype(jnp.float32)
        ref = jnp.einsum("nsh,he->nse", xb, wb) + extractor.b[None, :, :]
        assert jnp.allclose(emb_nn.astype(jnp.float32), ref,
                            atol=2e-2, rtol=2e-2), "no-norm mismatch"

    print("KERNEL_OK")
</pallas_src>

<mosaic_0001>
module attributes {stable_mosaic.version = 11 : i64} {
  func.func @_fc_norm_kernel(%arg0: i32, %arg1: memref<16x128xbf16, #tpu.memory_space<vmem>>, %arg2: memref<128x128xbf16, #tpu.memory_space<vmem>>, %arg3: memref<1x128xf32, #tpu.memory_space<vmem>>, %arg4: memref<16x128xbf16, #tpu.memory_space<vmem>>) attributes {dimension_semantics = [#tpu.dimension_semantics<parallel>], iteration_bounds = array<i64: 4>, scalar_prefetch = 0 : i64, scratch_operands = 0 : i64, tpu.core_type = #tpu.core_type<tc>, window_params = [{transform_indices = @transform_0, window_bounds = array<i64: 16, 128>}, {pipeline_mode = #tpu.pipeline_mode<synchronous>, transform_indices = @transform_1, window_bounds = array<i64: 128, 128>}, {pipeline_mode = #tpu.pipeline_mode<synchronous>, transform_indices = @transform_2, window_bounds = array<i64: 1, 128>}, {transform_indices = @transform_3, window_bounds = array<i64: 16, 128>}]} {
    %c0 = arith.constant 0 : index
    %c0_0 = arith.constant 0 : index
    %0 = vector.load %arg1[%c0, %c0_0] : memref<16x128xbf16, #tpu.memory_space<vmem>>, vector<16x128xbf16>
    %c0_1 = arith.constant 0 : index
    %c0_2 = arith.constant 0 : index
    %1 = vector.load %arg2[%c0_1, %c0_2] : memref<128x128xbf16, #tpu.memory_space<vmem>>, vector<128x128xbf16>
    %cst = arith.constant dense<0.000000e+00> : vector<16x128xf32>
    %2 = tpu.matmul %0, %1, %cst {dimension_numbers = #tpu.dot_dimension_numbers<[1], [0], [0], [1], [0, 0, 1, 1], [], []>} : vector<16x128xbf16>, vector<128x128xbf16>, vector<16x128xf32> -> vector<16x128xf32>
    %c0_3 = arith.constant 0 : index
    %c0_4 = arith.constant 0 : index
    %3 = vector.load %arg3[%c0_3, %c0_4] : memref<1x128xf32, #tpu.memory_space<vmem>>, vector<1x128xf32>
    %4 = vector.broadcast %3 : vector<1x128xf32> to vector<16x128xf32>
    %5 = arith.addf %2, %4 : vector<16x128xf32>
    %6 = arith.mulf %5, %5 : vector<16x128xf32>
    %cst_5 = arith.constant dense<0.000000e+00> : vector<16xf32>
    %7 = vector.multi_reduction <add>, %6, %cst_5 [1] : vector<16x128xf32> to vector<16xf32>
    %8 = vector.shape_cast %7 : vector<16xf32> to vector<16x1xf32>
    %cst_6 = arith.constant 1.000000e-24 : f32
    %9 = vector.broadcast %cst_6 : f32 to vector<16x1xf32>
    %10 = arith.maximumf %8, %9 : vector<16x1xf32>
    %11 = math.rsqrt %10 : vector<16x1xf32>
    %12 = vector.broadcast %11 : vector<16x1xf32> to vector<16x128xf32>
    %13 = arith.mulf %5, %12 : vector<16x128xf32>
    %14 = arith.truncf %13 : vector<16x128xf32> to vector<16x128xbf16>
    %c0_7 = arith.constant 0 : index
    %c0_8 = arith.constant 0 : index
    %15 = vector.load %arg4[%c0_7, %c0_8] : memref<16x128xbf16, #tpu.memory_space<vmem>>, vector<16x128xbf16>
    tpu.vector_store %arg4[%c0_7, %c0_8], %14 {strides = array<i32>} : memref<16x128xbf16, #tpu.memory_space<vmem>>, vector<16x128xbf16>,
    return
  }
  func.func @transform_0(%arg0: i32) -> (i32, i32) {
    %c0_i32 = arith.constant 0 : i32
    %c0_i32_0 = arith.constant 0 : i32
    return %arg0, %c0_i32 : i32, i32
  }
  func.func @transform_1(%arg0: i32) -> (i32, i32) {
    %c0_i32 = arith.constant 0 : i32
    %c0_i32_0 = arith.constant 0 : i32
    %c0_i32_1 = arith.constant 0 : i32
    return %c0_i32, %c0_i32_0 : i32, i32
  }
  func.func @transform_2(%arg0: i32) -> (i32, i32) {
    %c0_i32 = arith.constant 0 : i32
    %c0_i32_0 = arith.constant 0 : i32
    %c0_i32_1 = arith.constant 0 : i32
    return %c0_i32, %c0_i32_0 : i32, i32
  }
  func.func @transform_3(%arg0: i32) -> (i32, i32) {
    %c0_i32 = arith.constant 0 : i32
    %c0_i32_0 = arith.constant 0 : i32
    return %arg0, %c0_i32 : i32, i32
  }
}

</mosaic_0001>

<bundles_post_ra>
// kernel: _run_flat.1
= control target key start
LH: loop header
LB: loop body
LE: loop exit
PB: predicated region body
PF: predicated region fallthrough
CT: control target
= control target key end

     0   :  { %s485_s12 = smov 0   ;;  %s536_s0 = inlined_call_operand.vmem [shape: bf16[64,128], index: 0, kind: input, shape index: {}]   ;;  %s537_s1 = inlined_call_operand.vmem [shape: bf16[128,128], index: 1, kind: input, shape index: {}]   ;;  %s538_s2 = inlined_call_operand.vmem [shape: f32[1,128], index: 2, kind: input, shape index: {}]   ;;  %s539_s3 = inlined_call_operand.vmem [shape: bf16[64,128], index: 3, kind: output, shape index: {}]  }
   0x1 LB: > { %s373_s13 = sadd.s32 4294967295, %s461_s12   ;;  %p377_p0 = scmp.ge.s32.totalorder %s461_s12, 1  ;;  %s461_s12 = sphi %s485_s12, %s13_s12  }
   0x2   : > { %p138_p1 = scmp.lt.s32.totalorder %s461_s12, 5 }
   0x4   : > { %p139_p2 = pnand %p377_p0, %p138_p1 }
   0x5   : > { %v442_v0 = vld [vmem:[%s537_s1] sm:$0xff] (!%p139_p2)   ;;  %v463_v1 = vmov (!%p139_p2), 0.0   ;;  %v443_v2 = vld [vmem:[%s537_s1 + $0x8] sm:$0xff] (!%p139_p2)   ;;  %vm464_vm0 = vmmov (!%p139_p2), 0   ;;  %s378_s18 = sshll.u32 (!%p139_p2), %s373_s13, 1  ;;  %v444_v3 = vld [vmem:[%s537_s1 + $0x10] sm:$0xff] (!%p139_p2)  }
   0x6   : > { %142 = sbr.rel (%p139_p2) target bundleno = 418 (0x1a2), region = 32  ;;  %412 = vmatprep.subr.bf16.mxu0 (!%p139_p2), %v463_v1  ;;  %428 = vmatprep.mubr.msk.bf16.mxu0 (!%p139_p2), %vm464_vm0, %v463_v1  ;;  %p163_p3 = scmp.lt.s32.totalorder (!%p139_p2), %s378_s18, 7  ;;  %v445_v4 = vld [vmem:[%s537_s1 + $0x18] sm:$0xff] (!%p139_p2)   ;;  %v446_v5 = vld [vmem:[%s537_s1 + $0x20] sm:$0xff] (!%p139_p2)   ;;  %v447_v6 = vld [vmem:[%s537_s1 + $0x28] sm:$0xff] (!%p139_p2)  }
   0x7   : > { %413 = vmatpush3.bf16.msra.mxu0 (!%p139_p2), %v442_v0  ;;  %v448_v7 = vld [vmem:[%s537_s1 + $0x30] sm:$0xff] (!%p139_p2)   ;;  %v449_v8 = vld [vmem:[%s537_s1 + $0x38] sm:$0xff] (!%p139_p2)   ;;  %v382_v10 = vld [vmem:[%s538_s2] ss:$0 sm:$0xff] (!%p139_p2) }
   0x8   : > { %414 = vmatprep.subr.bf16.mxu0 (!%p139_p2), %v463_v1 }
   0xb   : > { %415 = vmatpush3.bf16.msra.mxu0 (!%p139_p2), %v443_v2 }
   0xc   : > { %416 = vmatprep.subr.bf16.mxu0 (!%p139_p2), %v463_v1 }
   0xd   : > { %s541_s18 = smov (!%p163_p3, %s378_s18), 7 }
   0xe   : > { %s379_s21 = sshll.u32 %s541_s18, 2 }
   0xf   : > { %s166_s24 = scalar_lea.vmem %s536_s0, %s379_s21  ;;  %417 = vmatpush3.bf16.msra.mxu0 %v444_v3  ;;  %s172_s13 = scalar_lea.vmem %s539_s3, %s379_s21 }
  0x10   : > { %418 = vmatprep.subr.bf16.mxu0 %v463_v1  ;;  %v450_v9 = vld [vmem:[%s166_s24] sm:$0xff]  }
  0x13   : > { %419 = vmatpush3.bf16.msra.mxu0 %v445_v4 }
  0x14   : > { %420 = vmatprep.subr.bf16.mxu0 %v463_v1 }
  0x17   : > { %421 = vmatpush3.bf16.msra.mxu0 %v446_v5 }
  0x18   : > { %422 = vmatprep.subr.bf16.mxu0 %v463_v1 }
  0x1b   : > { %423 = vmatpush3.bf16.msra.mxu0 %v447_v6 }
  0x1c   : > { %424 = vmatprep.subr.bf16.mxu0 %v463_v1 }
  0x1f   : > { %425 = vmatpush3.bf16.msra.mxu0 %v448_v7 }
  0x20   : > { %426 = vmatprep.subr.bf16.mxu0 %v463_v1 }
  0x23   : > { %427 = vmatpush3.bf16.msra.mxu0 %v449_v8 }
  0x26   : > { %429 = vmatmul.mubr.bf16.vlgmr.msra.gmra.mrb[0].mxu0 %v450_v9 }
  0xf9   : > { %v288_v11 = vpop.f32.mrb[0].mxu0 }
  0xfa   : > { %v289_v12 = vadd.f32 %v382_v10, %v288_v11  ;;  %v430_v13 = vpop.f32.mrb[1].mxu0 }
  0xfb   : > { %v291_v14 = vpop.f32.mrb[2].mxu0 }
  0xfc   : > { %v292_v15 = vadd.f32 %v382_v10, %v291_v14  ;;  %v431_v16 = vpop.f32.mrb[3].mxu0  ;;  %v295_v17 = vmul.f32 %v289_v12, %v289_v12 }
  0xfe   : > { %297 = vadd.xlane.f32.xlu0 %v295_v17  ;;  %v296_v18 = vmul.f32 %v292_v15, %v292_v15 }
 0x102   : > { %299 = vadd.xlane.f32.xlu0 %v296_v18 }
 0x18b   : > { %v298_v19 = vpop.xlane.xlu0 %297 }
 0x18c   : > { %v301_v20 = vmax.f32 %v298_v19, 1e-24 }
 0x18e   : > { %451 = vrsqrt.f32 %v301_v20 }
 0x18f   : > { %v300_v21 = vpop.xlane.xlu0 %299 }
 0x190   : > { %v302_v22 = vmax.f32 %v300_v21, 1e-24 }
 0x192   : > { %453 = vrsqrt.f32 %v302_v22 }
 0x198   : > { %v452_v23 = vpop.eup %451 }
 0x199   : > { %v305_v25 = vmul.f32 %v452_v23, %v289_v12 }
 0x19c   : > { %v454_v24 = vpop.eup %453 }
 0x19d   : > { %v306_v26 = vmul.f32 %v454_v24, %v292_v15 }
 0x19f   : > { %v401_v27 = vpack.c.bf16 %v306_v26, %v305_v25 }
 0x1a1   : > { %402 = vst [vmem:[%s172_s13] sm:$0xff] %v401_v27  }
 0x1a2 PF: > { %s13_s12 = sadd.s32 1, %s461_s12  }
 0x1a3   : > { %p10_p4 = scmp.ge.s32.totalorder %s13_s12, 6  }
 0x1a5   :  { %12 = sbr.rel (!%p10_p4) target bundleno = 1 (0x1), region = 62 }

</bundles_post_ra>
